<compile_context>
chip_gen: v7x
topology: tpu7x:2x2x1
jax: 0.10.0
libtpu: 0.0.40
codegen_flags: <defaults>
</compile_context>

<pallas_src>
import jax
import jax.numpy as jnp
from jax.experimental import pallas as pl
from jax.experimental.pallas import tpu as pltpu

LANES = 128
CHUNK_ROWS = 512          # rows per in-kernel streaming chunk (256 KiB f32)


def _device_kind() -> str:
    try:
        return jax.devices()[0].device_kind.lower()
    except Exception:
        return ""


def _chip_config():
    """(block_bytes_per_input, vmem_limit_bytes_or_None, tensorcores_per_device)."""
    kind = _device_kind()
    if ("v7" in kind) or ("tpu7" in kind) or ("7x" in kind):
        # 64 MiB physical VMEM/TC, 3.2 TB/s HBM: big blocks, raised scoped limit.
        return 8 << 20, 40 << 20, 2
    if "v6" in kind:
        # 128 MiB physical, 32 MiB default scoped limit: 4 MiB blocks fit w/ headroom.
        return 4 << 20, None, 1
    if ("v5p" in kind) or ("v4" in kind):
        # megacore chips: two TCs, plenty of VMEM.
        return 4 << 20, None, 2
    # v5e / unknown: conservative (16 MiB default scoped-VMEM limit).
    return 2 << 20, None, 1


def _make_mse_kernel(rows, tr, chunk, steps_per_slice, last_block, needs_mask):
    """Kernel with all shape parameters baked in as Python constants."""
    n_chunks = tr // chunk
    unroll = n_chunks <= 8   # short fixed inner loops: unroll for LLO visibility

    def accumulate(p_ref, t_ref, acc_ref, blk, masked):
        # Stream over the (tr, 128) VMEM block in (chunk, 128) pieces so the
        # elementwise temporaries stay small regardless of tr.
        def body(j, carry):
            off = pl.multiple_of(j * chunk, chunk)
            d = (p_ref[pl.ds(off, chunk), :].astype(jnp.float32)
                 - t_ref[pl.ds(off, chunk), :].astype(jnp.float32))
            if masked:
                # Mask rows past the real row count BEFORE squaring, so any
                # out-of-bounds block padding (arbitrary values) is zeroed.
                row_ids = (blk * tr + off
                           + jax.lax.broadcasted_iota(jnp.int32, (chunk, LANES), 0))
                d = jnp.where(row_ids < rows, d, jnp.float32(0.0))
            sq = d * d
            # Sublane partial sums into the (8, 128) accumulator (pure VPU).
            acc_ref[...] += sq.reshape(chunk // 8, 8, LANES).sum(axis=0)
            return carry

        jax.lax.fori_loop(0, n_chunks, body, 0, unroll=unroll)

    def kernel(p_ref, t_ref, o_ref, acc_ref):
        c = pl.program_id(0)          # slice ("parallel") axis
        i = pl.program_id(1)          # reduction ("arbitrary") axis
        blk = c * steps_per_slice + i  # logical (un-clamped) block index

        @pl.when(i == 0)
        def _init():
            acc_ref[...] = jnp.zeros_like(acc_ref)

        if needs_mask:
            # Interior blocks: unmasked fast path (3 VALU ops/vreg).
            @pl.when(blk < last_block)
            def _fast():
                accumulate(p_ref, t_ref, acc_ref, blk, masked=False)

            # Last real block (ragged tail) and clamped overhang blocks: masked.
            @pl.when(blk >= last_block)
            def _edge():
                accumulate(p_ref, t_ref, acc_ref, blk, masked=True)
        else:
            accumulate(p_ref, t_ref, acc_ref, blk, masked=False)

        @pl.when(i == pl.num_programs(1) - 1)
        def _finalize():
            # Single cross-lane/sublane (XLU) reduce per slice -> SMEM scalar.
            o_ref[0, 0] = jnp.sum(acc_ref[...])

    return kernel


@jax.jit
def mse_loss(pred: jax.Array, target: jax.Array) -> jax.Array:
    """nn.MSELoss(reduction='sum')(pred.view(-1,1), target.view(-1,1)) / len(pred)."""
    p = pred.reshape(-1)
    t = target.reshape(-1)
    n = p.shape[0]

    itemsize = max(p.dtype.itemsize, t.dtype.itemsize)
    block_bytes, vmem_limit, cores = _chip_config()
    packing = max(1, 4 // itemsize)
    sublane_mult = 8 * packing                       # 8 f32 / 16 bf16 / 32 int8
    target_tr = block_bytes // (LANES * itemsize)    # dtype-independent bytes/block
    chunk = CHUNK_ROWS                               # multiple of sublane_mult

    # ---- split off the non-128-aligned tail (computed in plain JAX) ---------
    n_main = (n // LANES) * LANES
    min_elems = sublane_mult * LANES
    tail_sse = jnp.float32(0.0)

    if n_main < min_elems:
        # Tiny input: pad up to one minimal tile (negligible cost; zero padding
        # contributes 0 to the sum of squared diffs).
        pad_to = min_elems
        p_main = jnp.pad(p, (0, pad_to - n))
        t_main = jnp.pad(t, (0, pad_to - n))
        rows = pad_to // LANES
    else:
        if n_main != n:
            dt = p[n_main:].astype(jnp.float32) - t[n_main:].astype(jnp.float32)
            tail_sse = jnp.sum(dt * dt)
            p_main = p[:n_main]
            t_main = t[:n_main]
        else:
            p_main, t_main = p, t
        rows = n_main // LANES
        # TODO(synk): check the prefix slice fuses into the pallas_call
        # (allow_input_fusion) instead of materializing a copy on unaligned n.

    p2 = p_main.reshape(rows, LANES)   # contiguous reshape: no copy
    t2 = t_main.reshape(rows, LANES)

    # ---- block / grid geometry ----------------------------------------------
    if rows >= chunk:
        tr = min(target_tr, (rows // chunk) * chunk)   # multiple of chunk
    else:
        tr = (rows // sublane_mult) * sublane_mult     # single (small) chunk
        chunk = tr
    num_row_blocks = pl.cdiv(rows, tr)

    # Two slices only on 2-TC chips, and only when it doesn't waste DMA on a
    # clamped overhang block (odd block counts fall back to 1 slice unless the
    # input is large enough that one wasted block is <~12% of traffic).
    if cores >= 2 and num_row_blocks >= 2:
        num_slices = 2 if (num_row_blocks % 2 == 0 or num_row_blocks >= 9) else 1
    else:
        num_slices = 1
    steps_per_slice = pl.cdiv(num_row_blocks, num_slices)
    last_block = num_row_blocks - 1
    needs_mask = (rows % tr != 0) or (num_slices * steps_per_slice != num_row_blocks)

    def in_index_map(c, i):
        # Clamp so overhang blocks (fully masked in-kernel) never index OOB.
        return (jnp.minimum(c * steps_per_slice + i, last_block), 0)

    kernel = _make_mse_kernel(rows, tr, chunk, steps_per_slice, last_block,
                              needs_mask)

    # TODO(synk): verify with an xprof trace that the leading "parallel" axis
    # shards across both TensorCores on v7x; otherwise switch to CORE_PARALLEL.
    compiler_kwargs = dict(dimension_semantics=("parallel", "arbitrary"))
    if vmem_limit is not None:
        compiler_kwargs["vmem_limit_bytes"] = vmem_limit

    partials = pl.pallas_call(
        kernel,
        out_shape=jax.ShapeDtypeStruct((num_slices, 1), jnp.float32),
        grid_spec=pltpu.PrefetchScalarGridSpec(
            num_scalar_prefetch=0,
            grid=(num_slices, steps_per_slice),
            in_specs=[
                pl.BlockSpec((tr, LANES), in_index_map),
                pl.BlockSpec((tr, LANES), in_index_map),
            ],
            out_specs=pl.BlockSpec((1, 1), lambda c, i: (c, 0),
                                   memory_space=pltpu.SMEM),
            scratch_shapes=[pltpu.VMEM((8, LANES), jnp.float32)],
        ),
        compiler_params=pltpu.CompilerParams(**compiler_kwargs),
        cost_estimate=pl.CostEstimate(
            flops=3 * rows * LANES,
            transcendentals=0,
            bytes_accessed=2 * rows * LANES * itemsize,
        ),
    )(p2, t2)

    sse = jnp.sum(partials) + tail_sse
    # sum of squared errors / number of elements (len(pred) after view(-1, 1))
    return (sse / jnp.float32(n)).astype(jnp.float32)


if __name__ == "__main__":
    key = jax.random.PRNGKey(0)
    k1, k2, k3, k4, k5, k6, k7, k8 = jax.random.split(key, 8)

    # Case 1: module-typical small input (128-aligned element count).
    pred = jax.random.normal(k1, (2, 4, 16, 16), dtype=jnp.float32)
    target = jax.random.normal(k2, (2, 4, 16, 16), dtype=jnp.float32)
    loss = jax.block_until_ready(mse_loss(pred, target))
    ref = jnp.sum((pred.reshape(-1) - target.reshape(-1)) ** 2) / pred.size
    assert jnp.allclose(loss, ref, rtol=1e-5, atol=1e-5), (loss, ref)

    # Case 2: ragged row count (rows not a multiple of the block) -> mask path.
    pred2 = jax.random.normal(k3, (3, 5, 13, 128), dtype=jnp.float32)
    target2 = jax.random.normal(k4, (3, 5, 13, 128), dtype=jnp.float32)
    loss2 = jax.block_until_ready(mse_loss(pred2, target2))
    ref2 = jnp.sum((pred2.reshape(-1) - target2.reshape(-1)) ** 2) / pred2.size
    assert jnp.allclose(loss2, ref2, rtol=1e-5, atol=1e-5), (loss2, ref2)

    # Case 3: element count not a multiple of 128 -> plain-JAX tail (no full pad).
    pred3 = jax.random.normal(k5, (2085,), dtype=jnp.float32)
    target3 = jax.random.normal(k6, (2085,), dtype=jnp.float32)
    loss3 = jax.block_until_ready(mse_loss(pred3, target3))
    ref3 = jnp.sum((pred3 - target3) ** 2) / pred3.size
    assert jnp.allclose(loss3, ref3, rtol=1e-5, atol=1e-5), (loss3, ref3)

    # Case 4: bf16 inputs -> 16-row sublane packing path, f32 accumulation.
    pred4 = jax.random.normal(k7, (4, 16, 32), dtype=jnp.bfloat16)
    target4 = jax.random.normal(k8, (4, 16, 32), dtype=jnp.bfloat16)
    loss4 = jax.block_until_ready(mse_loss(pred4, target4))
    d4 = pred4.reshape(-1).astype(jnp.float32) - target4.reshape(-1).astype(jnp.float32)
    ref4 = jnp.sum(d4 * d4) / pred4.size
    assert jnp.allclose(loss4, ref4, rtol=1e-3, atol=1e-3), (loss4, ref4)

    print("KERNEL_OK")
</pallas_src>

<mosaic_0001>
module attributes {stable_mosaic.version = 11 : i64} {
  func.func @kernel(%arg0: i32, %arg1: i32, %arg2: memref<16x128xf32, #tpu.memory_space<vmem>>, %arg3: memref<16x128xf32, #tpu.memory_space<vmem>>, %arg4: memref<1x1xf32, #tpu.memory_space<smem>>, %arg5: memref<8x128xf32, #tpu.memory_space<vmem>>) attributes {dimension_semantics = [#tpu.dimension_semantics<parallel>, #tpu.dimension_semantics<arbitrary>], iteration_bounds = array<i64: 1, 1>, scalar_prefetch = 0 : i64, scratch_operands = 1 : i64, tpu.core_type = #tpu.core_type<tc>, window_params = [{transform_indices = @transform_0, window_bounds = array<i64: 16, 128>}, {transform_indices = @transform_1, window_bounds = array<i64: 16, 128>}, {transform_indices = @transform_2, window_bounds = array<i64: 1, 1>}]} {
    %c0_i32 = arith.constant 0 : i32
    %0 = arith.cmpi eq, %arg1, %c0_i32 : i32
    %1 = arith.extui %0 : i1 to i32
    %c0_i32_0 = arith.constant 0 : i32
    %2 = arith.cmpi ne, %1, %c0_i32_0 : i32
    scf.if %2 {
      %cst_9 = arith.constant 0.000000e+00 : f32
      %19 = vector.broadcast %cst_9 : f32 to vector<8x128xf32>
      %c0_10 = arith.constant 0 : index
      %c0_11 = arith.constant 0 : index
      %20 = vector.load %arg5[%c0_10, %c0_11] : memref<8x128xf32, #tpu.memory_space<vmem>>, vector<8x128xf32>
      tpu.vector_store %arg5[%c0_10, %c0_11], %19 {strides = array<i32>} : memref<8x128xf32, #tpu.memory_space<vmem>>, vector<8x128xf32>,
    } else {
    }
    %c0_i32_1 = arith.constant 0 : i32
    %c16_i32 = arith.constant 16 : i32
    %3 = arith.muli %c0_i32_1, %c16_i32 : i32
    %4 = tpu.assume_multiple %3, 16 : i32
    %5 = arith.index_cast %4 : i32 to index
    %c0 = arith.constant 0 : index
    %6 = vector.load %arg2[%5, %c0] : memref<16x128xf32, #tpu.memory_space<vmem>>, vector<16x128xf32>
    %7 = arith.index_cast %4 : i32 to index
    %c0_2 = arith.constant 0 : index
    %8 = vector.load %arg3[%7, %c0_2] : memref<16x128xf32, #tpu.memory_space<vmem>>, vector<16x128xf32>
    %9 = arith.subf %6, %8 : vector<16x128xf32>
    %10 = arith.mulf %9, %9 : vector<16x128xf32>
    %c0_3 = arith.constant 0 : index
    %c0_4 = arith.constant 0 : index
    %11 = vector.load %arg5[%c0_3, %c0_4] : memref<8x128xf32, #tpu.memory_space<vmem>>, vector<8x128xf32>
    %12 = vector.shape_cast %10 : vector<16x128xf32> to vector<2x8x128xf32>
    %cst = arith.constant dense<0.000000e+00> : vector<8x128xf32>
    %13 = vector.multi_reduction <add>, %12, %cst [0] : vector<2x8x128xf32> to vector<8x128xf32>
    %14 = arith.addf %11, %13 : vector<8x128xf32>
    %c0_5 = arith.constant 0 : index
    %c0_6 = arith.constant 0 : index
    %15 = vector.load %arg5[%c0_5, %c0_6] : memref<8x128xf32, #tpu.memory_space<vmem>>, vector<8x128xf32>
    tpu.vector_store %arg5[%c0_5, %c0_6], %14 {strides = array<i32>} : memref<8x128xf32, #tpu.memory_space<vmem>>, vector<8x128xf32>,
    %c1_i32 = arith.constant 1 : i32
    %c0_i32_7 = arith.constant 0 : i32
    %16 = arith.cmpi eq, %arg1, %c0_i32_7 : i32
    %17 = arith.extui %16 : i1 to i32
    %c0_i32_8 = arith.constant 0 : i32
    %18 = arith.cmpi ne, %17, %c0_i32_8 : i32
    scf.if %18 {
      %c0_9 = arith.constant 0 : index
      %c0_10 = arith.constant 0 : index
      %19 = vector.load %arg5[%c0_9, %c0_10] : memref<8x128xf32, #tpu.memory_space<vmem>>, vector<8x128xf32>
      %20 = vector.shape_cast %19 : vector<8x128xf32> to vector<1x8x128xf32>
      %cst_11 = arith.constant dense<0.000000e+00> : vector<1xf32>
      %21 = vector.multi_reduction <add>, %20, %cst_11 [1, 2] : vector<1x8x128xf32> to vector<1xf32>
      %22 = vector.shape_cast %21 : vector<1xf32> to vector<1x1x1xf32>
      %23 = vector.extract %22[0, 0, 0] : f32 from vector<1x1x1xf32>
      %c0_12 = arith.constant 0 : index
      %c0_13 = arith.constant 0 : index
      %24 = memref.load %arg4[%c0_12, %c0_13] : memref<1x1xf32, #tpu.memory_space<smem>>
      memref.store %23, %arg4[%c0_12, %c0_13] : memref<1x1xf32, #tpu.memory_space<smem>>
    } else {
    }
    return
  }
  func.func @transform_0(%arg0: i32, %arg1: i32) -> (i32, i32) {
    %c1_i32 = arith.constant 1 : i32
    %0 = arith.muli %arg0, %c1_i32 : i32
    %1 = arith.addi %0, %arg1 : i32
    %c0_i32 = arith.constant 0 : i32
    %2 = arith.minsi %1, %c0_i32 : i32
    %c0_i32_0 = arith.constant 0 : i32
    %c0_i32_1 = arith.constant 0 : i32
    return %2, %c0_i32_0 : i32, i32
  }
  func.func @transform_1(%arg0: i32, %arg1: i32) -> (i32, i32) {
    %c1_i32 = arith.constant 1 : i32
    %0 = arith.muli %arg0, %c1_i32 : i32
    %1 = arith.addi %0, %arg1 : i32
    %c0_i32 = arith.constant 0 : i32
    %2 = arith.minsi %1, %c0_i32 : i32
    %c0_i32_0 = arith.constant 0 : i32
    %c0_i32_1 = arith.constant 0 : i32
    return %2, %c0_i32_0 : i32, i32
  }
  func.func @transform_2(%arg0: i32, %arg1: i32) -> (i32, i32) {
    %c0_i32 = arith.constant 0 : i32
    %c0_i32_0 = arith.constant 0 : i32
    return %arg0, %c0_i32 : i32, i32
  }
}

</mosaic_0001>

<bundles_post_ra>
// kernel: mse_loss.1
= control target key start
LH: loop header
LB: loop body
LE: loop exit
PB: predicated region body
PF: predicated region fallthrough
CT: control target
= control target key end

     0   :  { %s188_s0 = inlined_call_operand.vmem [shape: f32[16,128], index: 0, kind: input, shape index: {}]   ;;  %s189_s1 = inlined_call_operand.vmem [shape: f32[16,128], index: 1, kind: input, shape index: {}]   ;;  %s190_s2 = inlined_call_operand.hbm [shape: f32[1,1], index: 2, kind: output, shape index: {}]  }
   0x1   :  { %v81_v0 = vld [vmem:[%s188_s0] sm:$0xff]  ;;  %v82_v1 = vld [vmem:[%s188_s0 + $0x8] sm:$0xff] }
   0x2   :  { %v83_v2 = vld [vmem:[%s189_s1] sm:$0xff]  ;;  %v84_v3 = vld [vmem:[%s189_s1 + $0x8] sm:$0xff] }
   0x3   :  { %v85_v4 = vsub.f32 %v81_v0, %v83_v2 }
   0x4   :  { %7 = vsyncpa [#allocation4], 0  ;;  %v86_v5 = vsub.f32 %v82_v1, %v84_v3  ;;  %s136_s1 = scalar_lea.hbm %s190_s2, 16 }
   0x5   :  { %v87_v6 = vmul.f32 %v85_v4, %v85_v4  ;;  %p137_p0 = scmp.ne.s32.totalorder %s190_s2, %s136_s1  ;;  %p140_p1 = scmp.lt.u32.totalorder %s136_s1, %s190_s2 }
   0x6   :  { %v88_v7 = vmul.f32 %v86_v5, %v86_v5 }
   0x7   :  { %p142_p2 = pnand %p140_p1, %p137_p0 }
   0x8   :  { %v90_v8 = vadd.f32 %v88_v7, %v87_v6 }
   0xa   :  { %97 = vadd.xlane.f32.xlu0 %v90_v8 }
  0x97   :  { %v98_v9 = vpop.xlane.xlu0 %97 }
  0x98   :  { %v99_v10 = vrot.slane %v98_v9, 4 }
  0x9a   :  { %v100_v11 = vadd.f32 %v99_v10, %v98_v9 }
  0x9c   :  { %v101_v12 = vrot.slane %v100_v11, 2 }
  0x9e   :  { %v102_v13 = vadd.f32 %v101_v12, %v100_v11 }
  0xa0   :  { %v103_v14 = vrot.slane %v102_v13, 1 }
  0xa2   :  { %v104_v15 = vadd.f32 %v103_v14, %v102_v13 }
  0xa4   :  { %133 = vpush %v104_v15 }
  0xd5   :  { %s134_s0 = spop %133 }
  0xd6   :  { %107 = sst [smem:[#allocation3]] %s134_s0 }
  0xd7   :  { %145 = shalt.err (!%p142_p2)
}
  0xd8   :  { %s148_s23 = smov [#allocation3]  }
  0xd9   :  { %115 = dma.smem_to_hbm %s148_s23, 16, %s190_s2, [#allocation4]  }
  0xda   :  { %146 = dma.done.wait [#allocation4], 16  }
  0xdb   :  { %147 = vsyncadd [#allocation4], 4294967280 }
  0xdc   :  { %119 = sfence }
  0xdd   :  { %120 = vsyncpa [#allocation4], 1 }

</bundles_post_ra>
